<compile_context>
chip_gen: v6e
topology: v6e:2x2x1
jax: 0.10.0
libtpu: 0.0.40
codegen_flags: <defaults>
</compile_context>

<pallas_src>
import jax
import jax.numpy as jnp
from jax.experimental import pallas as pl
from jax.experimental.pallas import tpu as pltpu


def _downsample_kernel(x_ref, w_ref, b_ref, out_ref):
    """3x3 / stride-2 / pad-1 conv for one (batch, output-row-stripe) grid point.

    x_ref : (1, TH+1, Wo_pad+1, 4*C) bf16  halo stripe of the phase-split padded input.
                                           channel layout: phase p=(ky%2)*2+(kx%2), block p*C.
    w_ref : (9*C, C)                 bf16  weight rows grouped by phase group (see wrapper).
    b_ref : (1, C)                   f32   bias.
    out_ref: (1, TH*Wo_pad, C)       f32   one flat (lane-dense) output stripe.
    """
    _, th_p1, wp, c4 = x_ref.shape
    TH, Wo, C = th_p1 - 1, wp - 1, c4 // 4
    M = TH * Wo

    # Stride-2 phase identity:
    #   x_pad[2i+ky, 2j+kx, c] == x_ph[i + ky//2, j + kx//2, ((ky%2)*2 + kx%2)*C + c]
    # so every tap is a plain shifted, unstrided slice of the stripe.
    # Phase-grouped views (dy = ky//2, dx = kx//2):
    s00 = x_ref[0, 0:TH, 0:Wo, :].reshape(M, 4 * C)            # taps (0,0),(0,1),(1,0),(1,1)
    s10 = x_ref[0, 1:th_p1, 0:Wo, 0:2 * C].reshape(M, 2 * C)   # taps (2,0),(2,1)
    s01a = x_ref[0, 0:TH, 1:wp, 0:C].reshape(M, C)             # tap  (0,2)
    s01b = x_ref[0, 0:TH, 1:wp, 2 * C:3 * C].reshape(M, C)     # tap  (1,2)
    s11 = x_ref[0, 1:th_p1, 1:wp, 0:C].reshape(M, C)           # tap  (2,2)

    # 5 MXU dots (bf16 x bf16 -> f32 accumulation), summing 9C of K without an im2col buffer.
    acc = jnp.dot(s00, w_ref[0:4 * C, :], preferred_element_type=jnp.float32)
    acc = acc + jnp.dot(s10, w_ref[4 * C:6 * C, :], preferred_element_type=jnp.float32)
    acc = acc + jnp.dot(s01a, w_ref[6 * C:7 * C, :], preferred_element_type=jnp.float32)
    acc = acc + jnp.dot(s01b, w_ref[7 * C:8 * C, :], preferred_element_type=jnp.float32)
    acc = acc + jnp.dot(s11, w_ref[8 * C:9 * C, :], preferred_element_type=jnp.float32)
    acc = acc + b_ref[...]

    out_ref[...] = acc.reshape(1, M, C).astype(out_ref.dtype)


def _pick_row_tile(ho, wo_pad, c, budget_bytes=40 << 20, target_m=1024):
    """Output-row stripe height: M = TH*Wo_pad near target, bounded by a VMEM budget."""
    th = max(1, min(ho, max(1, target_m // wo_pad)))
    if th >= 8:
        th -= th % 8  # keep TH a multiple of 8 when possible (aligned halo stripes)

    def per_step_bytes(t):
        stripe = (t + 1) * (wo_pad + 1) * 4 * c * 2   # bf16 input stripe
        out = t * wo_pad * c * 4                      # f32 output block
        wgt = 9 * c * c * 2                           # bf16 weight
        # 2x stripe + 2x weight (double-buffered) + 2x output + acc/temps headroom
        return 2 * stripe + 2 * wgt + 2 * out + 3 * out

    while th > 8 and per_step_bytes(th) > budget_bytes:
        th -= 8
    while th > 1 and per_step_bytes(th) > budget_bytes:
        th -= 1
    return max(th, 1)


def downsample_forward(x_nchw, w_oihw, b):
    """Downsample.forward: Conv2d(dim, dim, 3, stride=2, padding=1).

    x_nchw: (N, C, H, W) f32, w_oihw: (C, C, 3, 3) OIHW, b: (C,). Returns (N, C, Ho, Wo) f32.
    """
    N, C, H, W = x_nchw.shape
    Ho = (H - 1) // 2 + 1
    Wo = (W - 1) // 2 + 1

    # NCHW -> NHWC, bf16 activations, zero-pad (pad=1; +1 extra row/col if H/W odd so the
    # padded spatial dims are even for the stride-2 space-to-depth).
    pad_h = 1 + (H % 2)
    pad_w = 1 + (W % 2)
    x = jnp.transpose(x_nchw, (0, 2, 3, 1)).astype(jnp.bfloat16)
    x = jnp.pad(x, ((0, 0), (1, pad_h), (1, pad_w), (0, 0)))
    Hp, Wp = H + 1 + pad_h, W + 1 + pad_w
    Hp2, Wp2 = Hp // 2, Wp // 2            # == Ho + 1, Wo + 1

    # Space-to-depth: x_ph[n, i, j, (py*2+px)*C + c] = x_pad[n, 2i+py, 2j+px, c]
    x_ph = (x.reshape(N, Hp2, 2, Wp2, 2, C)
             .transpose(0, 1, 3, 2, 4, 5)
             .reshape(N, Hp2, Wp2, 4 * C))

    # Pad Wo to a multiple of 8 (sublane-clean in-kernel reshapes) and Ho to a multiple of TH
    # (no TH=1 fallback for awkward Ho). Extra rows/cols read zeros and are sliced off below.
    Wo_pad = -(-Wo // 8) * 8
    TH = _pick_row_tile(Ho, Wo_pad, C)
    Ho_pad = -(-Ho // TH) * TH
    R = Ho_pad // TH
    x_ph = jnp.pad(x_ph, ((0, 0), (0, Ho_pad - Ho), (0, Wo_pad - Wo), (0, 0)))
    Wp2p = Wo_pad + 1                       # x_ph now (N, Ho_pad + 1, Wo_pad + 1, 4C)

    # Overlapping halo stripes: stripe r holds phase-rows [r*TH, r*TH + TH]  (≈1/TH extra HBM).
    row_idx = jnp.arange(R)[:, None] * TH + jnp.arange(TH + 1)[None, :]      # (R, TH+1)
    x_stripes = jnp.take(x_ph, row_idx, axis=1)                              # (N,R,TH+1,Wp2p,4C)
    G = N * R
    x_stripes = x_stripes.reshape(G, TH + 1, Wp2p, 4 * C)

    # Weight: (Cout, Cin, 3, 3) OIHW -> (9C, C) bf16, rows grouped to match the kernel's
    # phase-group dots: [(0,0),(0,1),(1,0),(1,1)] | [(2,0),(2,1)] | (0,2) | (1,2) | (2,2).
    w_t = jnp.transpose(w_oihw, (2, 3, 1, 0))  # (3, 3, Cin, Cout)
    order = ((0, 0), (0, 1), (1, 0), (1, 1), (2, 0), (2, 1), (0, 2), (1, 2), (2, 2))
    w = jnp.concatenate([w_t[ky, kx] for ky, kx in order], axis=0).astype(jnp.bfloat16)
    b2 = b.reshape(1, C).astype(jnp.float32)

    M = TH * Wo_pad

    # Explicit VMEM budget from actual block sizes (default scoped VMEM is 16/32 MiB).
    stripe_b = (TH + 1) * Wp2p * 4 * C * 2
    out_b = M * C * 4
    est = 2 * stripe_b + 2 * (9 * C * C * 2) + 5 * out_b + (1 << 20)
    vmem_limit = int(min(max(4 * est, 16 << 20), 64 << 20))

    cost = pl.CostEstimate(
        flops=int(2 * N * Ho_pad * Wo_pad * 9 * C * C),
        transcendentals=0,
        bytes_accessed=int(x_stripes.size * 2 + w.size * 2 + b2.size * 4 + G * M * C * 4))

    out = pl.pallas_call(
        _downsample_kernel,
        out_shape=jax.ShapeDtypeStruct((G, M, C), jnp.float32),
        grid_spec=pltpu.PrefetchScalarGridSpec(
            num_scalar_prefetch=0,
            grid=(G,),
            in_specs=[
                pl.BlockSpec((1, TH + 1, Wp2p, 4 * C), lambda g: (g, 0, 0, 0)),
                pl.BlockSpec((9 * C, C), lambda g: (0, 0)),   # weight (constant block)
                pl.BlockSpec((1, C), lambda g: (0, 0)),       # bias   (constant block)
            ],
            out_specs=pl.BlockSpec((1, M, C), lambda g: (g, 0, 0)),
        ),
        compiler_params=pltpu.CompilerParams(
            dimension_semantics=("parallel",),
            vmem_limit_bytes=vmem_limit),
        cost_estimate=cost,
    )(x_stripes, w, b2)

    out = out.reshape(N, Ho_pad, Wo_pad, C)[:, :Ho, :Wo, :]
    return jnp.transpose(out, (0, 3, 1, 2))  # back to NCHW (PyTorch layout)


def reference_forward(x_nchw, w_oihw, b, precision=None):
    out = jax.lax.conv_general_dilated(
        x_nchw, w_oihw, window_strides=(2, 2), padding=((1, 1), (1, 1)),
        dimension_numbers=("NCHW", "OIHW", "NCHW"), precision=precision)
    return out + b.reshape(1, -1, 1, 1)


if __name__ == "__main__":
    # Small shapes consistent with the module: Conv2d(dim, dim, 3, 2, 1).
    N, DIM, H, W = 2, 4, 16, 16

    key = jax.random.PRNGKey(0)
    kx, kw, kb = jax.random.split(key, 3)
    x = jax.random.normal(kx, (N, DIM, H, W), jnp.float32)           # NCHW, as in PyTorch
    w = jax.random.normal(kw, (DIM, DIM, 3, 3), jnp.float32) * 0.1   # OIHW conv weight
    b = jax.random.normal(kb, (DIM,), jnp.float32) * 0.1

    out = downsample_forward(x, w, b)
    out = jax.block_until_ready(out)

    Ho, Wo = (H - 1) // 2 + 1, (W - 1) // 2 + 1
    assert out.shape == (N, DIM, Ho, Wo)
    assert bool(jnp.all(jnp.isfinite(out)))

    # Tight check: same bf16-rounded operands + f32 accumulation -> only summation-order noise.
    x_bf = x.astype(jnp.bfloat16).astype(jnp.float32)
    w_bf = w.astype(jnp.bfloat16).astype(jnp.float32)
    ref_tight = reference_forward(x_bf, w_bf, b, precision=jax.lax.Precision.HIGHEST)
    assert jnp.allclose(out, ref_tight, atol=1e-3, rtol=1e-3)

    # Loose check against the full-precision PyTorch-equivalent conv (bf16 operand rounding).
    ref = reference_forward(x, w, b, precision=jax.lax.Precision.HIGHEST)
    assert jnp.allclose(out, ref, atol=5e-2, rtol=5e-2)

    print("KERNEL_OK")
</pallas_src>

<mosaic_0001>
module attributes {stable_mosaic.version = 11 : i64} {
  func.func @_downsample_kernel(%arg0: i32, %arg1: memref<1x9x9x16xbf16, #tpu.memory_space<vmem>>, %arg2: memref<36x4xbf16, #tpu.memory_space<vmem>>, %arg3: memref<1x4xf32, #tpu.memory_space<vmem>>, %arg4: memref<1x64x4xf32, #tpu.memory_space<vmem>>) attributes {dimension_semantics = [#tpu.dimension_semantics<parallel>], iteration_bounds = array<i64: 2>, scalar_prefetch = 0 : i64, scratch_operands = 0 : i64, tpu.core_type = #tpu.core_type<tc>, window_params = [{transform_indices = @transform_0, window_bounds = array<i64: 1, 9, 9, 16>}, {pipeline_mode = #tpu.pipeline_mode<synchronous>, transform_indices = @transform_1, window_bounds = array<i64: 36, 4>}, {pipeline_mode = #tpu.pipeline_mode<synchronous>, transform_indices = @transform_2, window_bounds = array<i64: 1, 4>}, {transform_indices = @transform_3, window_bounds = array<i64: 1, 64, 4>}]} {
    %c0 = arith.constant 0 : index
    %c0_0 = arith.constant 0 : index
    %c0_1 = arith.constant 0 : index
    %c0_2 = arith.constant 0 : index
    %0 = vector.load %arg1[%c0, %c0_0, %c0_1, %c0_2] : memref<1x9x9x16xbf16, #tpu.memory_space<vmem>>, vector<1x8x8x16xbf16>
    %1 = vector.shape_cast %0 : vector<1x8x8x16xbf16> to vector<8x8x16xbf16>
    %2 = vector.shape_cast %1 : vector<8x8x16xbf16> to vector<64x16xbf16>
    %c0_3 = arith.constant 0 : index
    %c1 = arith.constant 1 : index
    %c0_4 = arith.constant 0 : index
    %c0_5 = arith.constant 0 : index
    %3 = vector.load %arg1[%c0_3, %c1, %c0_4, %c0_5] : memref<1x9x9x16xbf16, #tpu.memory_space<vmem>>, vector<1x8x8x8xbf16>
    %4 = vector.shape_cast %3 : vector<1x8x8x8xbf16> to vector<8x8x8xbf16>
    %5 = vector.shape_cast %4 : vector<8x8x8xbf16> to vector<64x8xbf16>
    %c0_6 = arith.constant 0 : index
    %c0_7 = arith.constant 0 : index
    %c1_8 = arith.constant 1 : index
    %c0_9 = arith.constant 0 : index
    %6 = vector.load %arg1[%c0_6, %c0_7, %c1_8, %c0_9] : memref<1x9x9x16xbf16, #tpu.memory_space<vmem>>, vector<1x8x8x4xbf16>
    %7 = vector.shape_cast %6 : vector<1x8x8x4xbf16> to vector<8x8x4xbf16>
    %8 = vector.shape_cast %7 : vector<8x8x4xbf16> to vector<64x4xbf16>
    %c0_10 = arith.constant 0 : index
    %c0_11 = arith.constant 0 : index
    %c1_12 = arith.constant 1 : index
    %c8 = arith.constant 8 : index
    %9 = vector.load %arg1[%c0_10, %c0_11, %c1_12, %c8] : memref<1x9x9x16xbf16, #tpu.memory_space<vmem>>, vector<1x8x8x4xbf16>
    %10 = vector.shape_cast %9 : vector<1x8x8x4xbf16> to vector<8x8x4xbf16>
    %11 = vector.shape_cast %10 : vector<8x8x4xbf16> to vector<64x4xbf16>
    %c0_13 = arith.constant 0 : index
    %c1_14 = arith.constant 1 : index
    %c1_15 = arith.constant 1 : index
    %c0_16 = arith.constant 0 : index
    %12 = vector.load %arg1[%c0_13, %c1_14, %c1_15, %c0_16] : memref<1x9x9x16xbf16, #tpu.memory_space<vmem>>, vector<1x8x8x4xbf16>
    %13 = vector.shape_cast %12 : vector<1x8x8x4xbf16> to vector<8x8x4xbf16>
    %14 = vector.shape_cast %13 : vector<8x8x4xbf16> to vector<64x4xbf16>
    %c0_17 = arith.constant 0 : index
    %c0_18 = arith.constant 0 : index
    %15 = vector.load %arg2[%c0_17, %c0_18] : memref<36x4xbf16, #tpu.memory_space<vmem>>, vector<16x4xbf16>
    %cst = arith.constant dense<0.000000e+00> : vector<64x4xf32>
    %16 = tpu.matmul %2, %15, %cst {dimension_numbers = #tpu.dot_dimension_numbers<[1], [0], [0], [1], [0, 0, 1, 1], [], []>} : vector<64x16xbf16>, vector<16x4xbf16>, vector<64x4xf32> -> vector<64x4xf32>
    %c16 = arith.constant 16 : index
    %c0_19 = arith.constant 0 : index
    %17 = vector.load %arg2[%c16, %c0_19] : memref<36x4xbf16, #tpu.memory_space<vmem>>, vector<8x4xbf16>
    %cst_20 = arith.constant dense<0.000000e+00> : vector<64x4xf32>
    %18 = tpu.matmul %5, %17, %cst_20 {dimension_numbers = #tpu.dot_dimension_numbers<[1], [0], [0], [1], [0, 0, 1, 1], [], []>} : vector<64x8xbf16>, vector<8x4xbf16>, vector<64x4xf32> -> vector<64x4xf32>
    %19 = arith.addf %16, %18 : vector<64x4xf32>
    %c24 = arith.constant 24 : index
    %c0_21 = arith.constant 0 : index
    %20 = vector.load %arg2[%c24, %c0_21] : memref<36x4xbf16, #tpu.memory_space<vmem>>, vector<4x4xbf16>
    %cst_22 = arith.constant dense<0.000000e+00> : vector<64x4xf32>
    %21 = tpu.matmul %8, %20, %cst_22 {dimension_numbers = #tpu.dot_dimension_numbers<[1], [0], [0], [1], [0, 0, 1, 1], [], []>} : vector<64x4xbf16>, vector<4x4xbf16>, vector<64x4xf32> -> vector<64x4xf32>
    %22 = arith.addf %19, %21 : vector<64x4xf32>
    %c28 = arith.constant 28 : index
    %c0_23 = arith.constant 0 : index
    %23 = vector.load %arg2[%c28, %c0_23] : memref<36x4xbf16, #tpu.memory_space<vmem>>, vector<4x4xbf16>
    %cst_24 = arith.constant dense<0.000000e+00> : vector<64x4xf32>
    %24 = tpu.matmul %11, %23, %cst_24 {dimension_numbers = #tpu.dot_dimension_numbers<[1], [0], [0], [1], [0, 0, 1, 1], [], []>} : vector<64x4xbf16>, vector<4x4xbf16>, vector<64x4xf32> -> vector<64x4xf32>
    %25 = arith.addf %22, %24 : vector<64x4xf32>
    %c32 = arith.constant 32 : index
    %c0_25 = arith.constant 0 : index
    %26 = vector.load %arg2[%c32, %c0_25] : memref<36x4xbf16, #tpu.memory_space<vmem>>, vector<4x4xbf16>
    %cst_26 = arith.constant dense<0.000000e+00> : vector<64x4xf32>
    %27 = tpu.matmul %14, %26, %cst_26 {dimension_numbers = #tpu.dot_dimension_numbers<[1], [0], [0], [1], [0, 0, 1, 1], [], []>} : vector<64x4xbf16>, vector<4x4xbf16>, vector<64x4xf32> -> vector<64x4xf32>
    %28 = arith.addf %25, %27 : vector<64x4xf32>
    %c0_27 = arith.constant 0 : index
    %c0_28 = arith.constant 0 : index
    %29 = vector.load %arg3[%c0_27, %c0_28] : memref<1x4xf32, #tpu.memory_space<vmem>>, vector<1x4xf32>
    %30 = vector.broadcast %29 : vector<1x4xf32> to vector<64x4xf32>
    %31 = arith.addf %28, %30 : vector<64x4xf32>
    %32 = vector.shape_cast %31 : vector<64x4xf32> to vector<1x64x4xf32>
    %c0_29 = arith.constant 0 : index
    %c0_30 = arith.constant 0 : index
    %c0_31 = arith.constant 0 : index
    %33 = vector.load %arg4[%c0_29, %c0_30, %c0_31] : memref<1x64x4xf32, #tpu.memory_space<vmem>>, vector<1x64x4xf32>
    tpu.vector_store %arg4[%c0_29, %c0_30, %c0_31], %32 {strides = array<i32>} : memref<1x64x4xf32, #tpu.memory_space<vmem>>, vector<1x64x4xf32>,
    return
  }
  func.func @transform_0(%arg0: i32) -> (i32, i32, i32, i32) {
    %c0_i32 = arith.constant 0 : i32
    %c0_i32_0 = arith.constant 0 : i32
    %c0_i32_1 = arith.constant 0 : i32
    %c0_i32_2 = arith.constant 0 : i32
    return %arg0, %c0_i32, %c0_i32_0, %c0_i32_1 : i32, i32, i32, i32
  }
  func.func @transform_1(%arg0: i32) -> (i32, i32) {
    %c0_i32 = arith.constant 0 : i32
    %c0_i32_0 = arith.constant 0 : i32
    %c0_i32_1 = arith.constant 0 : i32
    return %c0_i32, %c0_i32_0 : i32, i32
  }
  func.func @transform_2(%arg0: i32) -> (i32, i32) {
    %c0_i32 = arith.constant 0 : i32
    %c0_i32_0 = arith.constant 0 : i32
    %c0_i32_1 = arith.constant 0 : i32
    return %c0_i32, %c0_i32_0 : i32, i32
  }
  func.func @transform_3(%arg0: i32) -> (i32, i32, i32) {
    %c0_i32 = arith.constant 0 : i32
    %c0_i32_0 = arith.constant 0 : i32
    %c0_i32_1 = arith.constant 0 : i32
    return %arg0, %c0_i32, %c0_i32_0 : i32, i32, i32
  }
}

</mosaic_0001>

<bundles_post_ra>
// kernel: tpu_custom_call.1
= control target key start
LH: loop header
LB: loop body
LE: loop exit
PB: predicated region body
PF: predicated region fallthrough
CT: control target
= control target key end

     0   :  { %s1221_s12 = smov 0   ;;  %s1464_s0 = inlined_call_operand.vmem [shape: bf16[2,9,9,16], index: 0, kind: input, shape index: {}]   ;;  %s1465_s1 = inlined_call_operand.vmem [shape: bf16[36,4], index: 1, kind: input, shape index: {}]   ;;  %s1466_s2 = inlined_call_operand.vmem [shape: f32[1,4], index: 2, kind: input, shape index: {}]   ;;  %s1467_s3 = inlined_call_operand.vmem [shape: f32[2,64,4], index: 3, kind: output, shape index: {}]  }
   0x1 LB: > { %s1024_s13 = sadd.s32 4294967295, %s1198_s12   ;;  %p1028_p0 = scmp.ge.s32.totalorder %s1198_s12, 1  ;;  %s1198_s12 = sphi %s1221_s12, %s13_s12  }
   0x2   : > { %p137_p1 = scmp.lt.s32.totalorder %s1198_s12, 3 }
   0x4   : > { %p138_p2 = pnand %p1028_p0, %p137_p1 }
   0x5   : > { %p161_p3 = scmp.lt.s32.totalorder (!%p138_p2), %s1024_s13, 1  ;;  %s1200_s24 = smov (!%p138_p2), 120  }
   0x6   : > { %141 = sbr.rel (%p138_p2) target bundleno = 363 (0x16b), region = 32 }
   0xb   : > { %v434_v0 = vld [vmem:[%s1465_s1 + $0x8] sm:$0xf]  ;;  %vm468_vm0 = vcmask 1043456   ;;  %s1471_s13 = smov (!%p161_p3, %s1024_s13), 1  ;;  %v1237_v2 = vld [vmem:[%s1465_s1] sm:$0xff]   ;;  %vm667_vm1 = vcmask 1041408  }
   0xc   : > { %1168 = vmatprep.subr.msk.bf16.mxu1 %vm468_vm0, %v434_v0  ;;  %v470_v1 = vsel %vm468_vm0, %v434_v0, 0  ;;  %1167 = vmatprep.subr.msk.bf16.mxu0 %vm468_vm0, %v434_v0  ;;  %v1242_v3 = vld [vmem:[%s1465_s1 + $0xc] sm:$0x3]  ;;  %s1172_s20 = smul.u32 72, %s1471_s13  ;;  %vm197_vm2 = vsmask.f32 3328 }
   0xd   : > { %1166 = vmatpush3.bf16.msra.mxu1 %v470_v1  ;;  %1116 = vmatpush3.bf16.msra.mxu0 %v470_v1  ;;  %vm198_vm3 = vsmask.f32 7440  ;;  %vm455_vm5 = vcmask 64512   ;;  %vm563_vm6 = vcmask 130048   ;;  %vm654_vm7 = vcmask 31744   ;;  %s1089_s29 = sshll.u32 %s1471_s13, 6 }
   0xe   : > { %1125 = vmatprep.subr.bf16.mxu1 %v1237_v2  ;;  %1169 = vmatprep.subr.msk.bf16.mxu0 %vm667_vm1, %v1242_v3  ;;  %s1251_s23 = scalar_lea.vmem %s1464_s0, %s1172_s20  ;;  %vm1282_vm4 = vmor %vm197_vm2, %vm198_vm3  ;;  %s1443_s7 = scalar_lea.vmem %s1467_s3, %s1089_s29 }
   0xf   : > { %v1254_v4 = vld [vmem:[%s1251_s23] sm:$0xf]  ;;  %v1257_v5 = vld [vmem:[%s1251_s23 + $0x8] sm:$0xf]  ;;  %v189_v6 = vld [vmem:[%s1251_s23 + $0x4] sm:$0x1] }
  0x10   : > { %v190_v7 = vld [vmem:[%s1251_s23 + $0xc] sm:$0x1]  ;;  %v201_v8 = vshrl.u32 %v1254_v4, 16  ;;  %v204_v9 = vshll.u32 %v1254_v4, 16  ;;  %v210_v10 = vshll.u32 %v189_v6, 16  ;;  %v215_v11 = vshrl.u32 %v1257_v5, 16 }
  0x11   : > { %v218_v12 = vshll.u32 %v1257_v5, 16  ;;  %v224_v13 = vshll.u32 %v190_v7, 16  ;;  %v1266_v14 = vld [vmem:[%s1251_s23 + $0x10] sm:$0xf]  ;;  %v1269_v15 = vld [vmem:[%s1251_s23 + $0x18] sm:$0xf] }
  0x12   : > { %v203_v16 = vrot.slane %v201_v8, 4  ;;  %v206_v17 = vrot.slane %v204_v9, 5  ;;  %v212_v18 = vrot.slane %v210_v10, 5  ;;  %v217_v19 = vrot.slane %v215_v11, 4  ;;  %v191_v20 = vld [vmem:[%s1251_s23 + $0x14] sm:$0x1] }
  0x13   : > { %v220_v21 = vrot.slane %v218_v12, 5  ;;  %v226_v22 = vrot.slane %v224_v13, 5  ;;  %v192_v23 = vld [vmem:[%s1251_s23 + $0x1c] sm:$0x1]  ;;  %v229_v24 = vshrl.u32 %v1266_v14, 16  ;;  %v232_v25 = vshll.u32 %v1266_v14, 16 }
  0x14   : > { %v207_v26 = vor.u32 %v206_v17, %v203_v16  ;;  %v238_v27 = vshll.u32 %v191_v20, 16  ;;  %v243_v28 = vshrl.u32 %v1269_v15, 16  ;;  %v246_v29 = vshll.u32 %v1269_v15, 16  ;;  %v1278_v30 = vld [vmem:[%s1251_s23 + $0x20] sm:$0xf] }
  0x15   : > { %v221_v32 = vor.u32 %v220_v21, %v217_v19  ;;  %v231_v33 = vrot.slane %v229_v24, 4  ;;  %v234_v34 = vrot.slane %v232_v25, 5  ;;  %v252_v35 = vshll.u32 %v192_v23, 16  ;;  %v1287_v36 = vld [vmem:[%s1251_s23 + $0x28] sm:$0xf] }
  0x16   : > { %v208_v37 = vrot.slane %v207_v26, 4  ;;  %v240_v38 = vrot.slane %v238_v27, 5  ;;  %v245_v39 = vrot.slane %v243_v28, 4  ;;  %v248_v40 = vrot.slane %v246_v29, 5  ;;  %v193_v41 = vld [vmem:[%s1251_s23 + $0x24] sm:$0x1] }
  0x17   : > { %v222_v42 = vrot.slane %v221_v32, 4  ;;  %v235_v43 = vor.u32 %v234_v34, %v231_v33  ;;  %v254_v44 = vrot.slane %v252_v35, 5  ;;  %v257_v45 = vshrl.u32 %v1278_v30, 16  ;;  %v194_v48 = vld [vmem:[%s1251_s23 + $0x2c] sm:$0x1] }
  0x18   : > { %v213_v46 = vsel %vm1282_vm4, %v208_v37, %v212_v18  ;;  %v249_v47 = vor.u32 %v248_v40, %v245_v39  ;;  %v260_v49 = vshll.u32 %v1278_v30, 16  ;;  %v266_v50 = vshll.u32 %v193_v41, 16  ;;  %v1299_v55 = vld [vmem:[%s1251_s23 + $0x30] sm:$0xf]  ;;  %v195_v59 = vld [vmem:[%s1251_s23 + $0x34] sm:$0x1] }
  0x19   : > { %v227_v51 = vsel %vm1282_vm4, %v222_v42, %v226_v22  ;;  %v236_v52 = vrot.slane %v235_v43, 4  ;;  %v259_v53 = vrot.slane %v257_v45, 4  ;;  %v271_v54 = vshrl.u32 %v1287_v36, 16  ;;  %v1308_v0 = vld [vmem:[%s1251_s23 + $0x38] sm:$0xf] }
  0x1a   : > { %v1301_v56 = vcombine.low %v213_v46, %v227_v51  ;;  %v250_v57 = vrot.slane %v249_v47, 4  ;;  %v262_v58 = vrot.slane %v260_v49, 5  ;;  %v274_v62 = vshll.u32 %v1287_v36, 16  ;;  %v196_v7 = vld [vmem:[%s1251_s23 + $0x3c] sm:$0x1] }
  0x1b   : > { %v241_v60 = vsel %vm1282_vm4, %v236_v52, %v240_v38  ;;  %v273_v61 = vrot.slane %v271_v54, 4  ;;  %v280_v63 = vshll.u32 %v194_v48, 16  ;;  %v285_v8 = vshrl.u32 %v1299_v55, 16  ;;  %v1324_v26 = vld [vmem:[%s1251_s23 + $0x28] sm:$0xf] }
  0x1c   : > { %745 = vrot.lane.b32.xlu0 %v1301_v56, %s1200_s24  ;;  %v255_v1 = vsel %vm1282_vm4, %v250_v57, %v254_v44  ;;  %v263_v6 = vor.u32 %v262_v58, %v259_v53  ;;  %v288_v9 = vshll.u32 %v1299_v55, 16  ;;  %v268_v11 = vrot.slane %v266_v50, 5  ;;  %v1327_v27 = vld [vmem:[%s1251_s23 + $0x30] sm:$0xf]  ;;  %v1339_v41 = vld [vmem:[%s1251_s23 + $0x38] sm:$0xf] }
  0x1d   : > { %v1317_v10 = vcombine.low %v241_v60, %v255_v1  ;;  %v276_v12 = vrot.slane %v274_v62, 5  ;;  %v294_v13 = vshll.u32 %v195_v59, 16  ;;  %v287_v17 = vrot.slane %v285_v8, 4  ;;  %v1191_v35 = vld [vmem:[%s1465_s1 + $0xc] ss:$0 sps:$4 sm:$0xcc]  }
  0x1e   : > { %v264_v16 = vrot.slane %v263_v6, 4  ;;  %v290_v18 = vrot.slane %v288_v9, 5  ;;  %v299_v19 = vshrl.u32 %v1308_v0, 16  ;;  %v282_v21 = vrot.slane %v280_v63, 5  ;;  %v1342_v42 = vld [vmem:[%s1251_s23 + $0x40] sm:$0xf] }
  0x1f   : > { %v277_v20 = vor.u32 %v276_v12, %v273_v61  ;;  %v302_v22 = vshll.u32 %v1308_v0, 16  ;;  %v308_v23 = vshll.u32 %v196_v7, 16  ;;  %v296_v32 = vrot.slane %v294_v13, 5  ;;  %v1032_v50 = vld [vmem:[%s1251_s23 + $0x8] sm:$0xf] }
  0x20   : > { %747 = vrot.lane.b32.xlu0 %v1317_v10, %s1200_s24  ;;  %v291_v24 = vor.u32 %v290_v18, %v287_v17  ;;  %v301_v25 = vrot.slane %v299_v19, 4  ;;  %v269_v28 = vsel %vm1282_vm4, %v264_v16, %v268_v11  ;;  %v1050_v40 = vcombine.low %v1324_v26, %v1327_v27  ;;  %v1033_v51 = vld [vmem:[%s1251_s23 + $0x10] sm:$0xf]  ;;  %v1034_v58 = vld [vmem:[%s1251_s23 + $0x18] sm:$0xf] }
  0x21   : > { %v278_v29 = vrot.slane %v277_v20, 4  ;;  %v304_v33 = vrot.slane %v302_v22, 5  ;;  %v310_v39 = vrot.slane %v308_v23, 5  ;;  %v1056_v46 = vcombine.low %v1254_v4, %v1257_v5  ;;  %v1035_v59 = vld [vmem:[%s1251_s23 + $0x20] sm:$0xf] }
  0x22   : > { %v292_v34 = vrot.slane %v291_v24, 4  ;;  %1121 = vmatprep.mubr.msk.bf16.mxu1 %vm455_vm5, %v1050_v40  ;;  %v1051_v47 = vcombine.low %v1339_v41, %v1342_v42  ;;  %v756_v48 = vrot.slane %v1191_v35, 2  ;;  %v321_v4 = vshrl.u32 %v1032_v50, 16  ;;  %v1040_v11 = vld [vmem:[%s1251_s23 + $0xc] sm:$0x1] }
  0x23   : > { %v283_v37 = vsel %vm1282_vm4, %v278_v29, %v282_v21  ;;  %v305_v38 = vor.u32 %v304_v33, %v301_v25  ;;  %v324_v5 = vshll.u32 %v1032_v50, 16  ;;  %v335_v53 = vshrl.u32 %v1033_v51, 16  ;;  %v1041_v12 = vld [vmem:[%s1251_s23 + $0x14] sm:$0x1] }
  0x24   : > { %v1344_v43 = vcombine.low %v269_v28, %v283_v37  ;;  %v297_v44 = vsel %vm1282_vm4, %v292_v34, %v296_v32  ;;  %1122 = vmatmul.mubr.msk.bf16.vlgmr.msra.gmra.mxu1 %vm455_vm5, %v1051_v47  ;;  %v338_v54 = vshll.u32 %v1033_v51, 16  ;;  %v1048_v57 = vcombine.low %v1032_v50, %v1033_v51  ;;  %v1042_v32 = vld [vmem:[%s1251_s23 + $0x1c] sm:$0x1] }
  0x25   : > { %v306_v45 = vrot.slane %v305_v38, 4  ;;  %1126 = vmatpush3.bf16.msra.mxu1 %v1237_v2  ;;  %1127 = vmatprep.mubr.msk.bf16.mxu1 %vm563_vm6, %v1056_v46  ;;  %v323_v60 = vrot.slane %v321_v4, 4  ;;  %v326_v61 = vrot.slane %v324_v5, 5  ;;  %v669_v62 = vsel %vm667_vm1, %v1242_v3, 0  ;;  %v1043_v38 = vld [vmem:[%s1251_s23 + $0x24] sm:$0x1] }
  0x26   : > { %749 = vrot.lane.b32.xlu1 %v1344_v43, %s1200_s24  ;;  %1170 = vmatprep.subr.msk.bf16.mxu1 %vm667_vm1, %v756_v48  ;;  %v337_v2 = vrot.slane %v335_v53, 4  ;;  %v340_v63 = vrot.slane %v338_v54, 5  ;;  %v1049_v1 = vcombine.low %v1034_v58, %v1035_v59  ;;  %v1057_v6 = vcombine.low %v1266_v14, %v1269_v15  ;;  %v845_v14 = vld [vmem:[%s1465_s1 + $0x10] sm:$0x3]  ;;  %v1045_v46 = vld [vmem:[%s1251_s23 + $0x34] sm:$0x1] }
  0x27   : > { %v311_v49 = vsel %vm1282_vm4, %v306_v45, %v310_v39  ;;  %1117 = vmatprep.mubr.msk.bf16.mxu0 %vm455_vm5, %v1048_v57  ;;  %v377_v7 = vshrl.u32 %v1324_v26, 16  ;;  %v380_v8 = vshll.u32 %v1324_v26, 16  ;;  %v1058_v9 = vcombine.low %v1278_v30, %v1287_v36  ;;  %v1044_v45 = vld [vmem:[%s1251_s23 + $0x2c] sm:$0x1] }
  0x28   : > { %v1359_v52 = vcombine.low %v297_v44, %v311_v49  ;;  %v391_v13 = vshrl.u32 %v1327_v27, 16  ;;  %v349_v16 = vshrl.u32 %v1034_v58, 16  ;;  %v352_v3 = vshll.u32 %v1034_v58, 16  ;;  %1118 = vmatmul.mubr.msk.bf16.vlgmr.msra.gmra.mxu0 %vm455_vm5, %v1049_v1 }
  0x29   : > { %v770_v17 = vsel %vm667_vm1, %v756_v48, 0  ;;  %v394_v15 = vshll.u32 %v1327_v27, 16  ;;  %v363_v18 = vshrl.u32 %v1035_v59, 16  ;;  %v366_v19 = vshll.u32 %v1035_v59, 16  ;;  %1136 = vmatpush3.bf16.msra.mxu0 %v669_v62  ;;  %1137 = vmatprep.mubr.msk.bf16.mxu0 %vm654_vm7, %v1301_v56 }
  0x2a   : > { %751 = vrot.lane.b32.xlu1 %v1359_v52, %s1200_s24  ;;  %v327_v30 = vor.u32 %v326_v61, %v323_v60  ;;  %v341_v36 = vor.u32 %v340_v63, %v337_v2  ;;  %v330_v20 = vshll.u32 %v1040_v11, 16  ;;  %v344_v21 = vshll.u32 %v1041_v12, 16  ;;  %1171 = vmatprep.subr.msk.bf16.mxu0 %vm667_vm1, %v845_v14  ;;  %v1046_v2 = vld [vmem:[%s1251_s23 + $0x3c] sm:$0x1] }
  0x2b   : > { %v379_v22 = vrot.slane %v377_v7, 4  ;;  %v382_v23 = vrot.slane %v380_v8, 5  ;;  %v393_v24 = vrot.slane %v391_v13, 4  ;;  %v351_v25 = vrot.slane %v349_v16, 4  ;;  %v1047_v8 = vld [vmem:[%s1251_s23 + $0x44] sm:$0x1] }
  0x2c   : > { %1128 = vmatmul.mubr.msk.bf16.vlgmr.msra.gmra.mxu1 %vm563_vm6, %v1057_v6  ;;  %v354_v26 = vrot.slane %v352_v3, 5  ;;  %v396_v27 = vrot.slane %v394_v15, 5  ;;  %v365_v28 = vrot.slane %v363_v18, 4  ;;  %v368_v29 = vrot.slane %v366_v19, 5 }
  0x2d   : > { %1131 = vmatprep.mubr.msk.bf16.mxu1 %vm563_vm6, %v1058_v9  ;;  %1146 = vmatpush3.bf16.msra.mxu1 %v770_v17  ;;  %v1059_v56 = vcombine.low %v1299_v55, %v1308_v0  ;;  %v328_v33 = vrot.slane %v327_v30, 4  ;;  %v342_v34 = vrot.slane %v341_v36, 4  ;;  %v332_v35 = vrot.slane %v330_v20, 5 }
  0x2e   : > { %v346_v37 = vrot.slane %v344_v21, 5  ;;  %v383_v39 = vor.u32 %v382_v23, %v379_v22  ;;  %v405_v40 = vshrl.u32 %v1339_v41, 16  ;;  %v871_v44 = vsel %vm667_vm1, %v845_v14, 0 }
  0x2f   : > { %v408_v47 = vshll.u32 %v1339_v41, 16  ;;  %v419_v48 = vshrl.u32 %v1342_v42, 16  ;;  %v355_v49 = vor.u32 %v354_v26, %v351_v25  ;;  %v358_v55 = vshll.u32 %v1042_v32, 16 }
  0x30   : > { %1138 = vmatmul.mubr.msk.bf16.vlgmr.msra.gmra.mxu0 %vm654_vm7, %v1317_v10  ;;  %v397_v0 = vor.u32 %v396_v27, %v393_v24  ;;  %v422_v50 = vshll.u32 %v1342_v42, 16  ;;  %v369_v51 = vor.u32 %v368_v29, %v365_v28  ;;  %v372_v4 = vshll.u32 %v1043_v38, 16 }
  0x31   : > { %1141 = vmatprep.mubr.msk.bf16.mxu0 %vm654_vm7, %v1344_v43  ;;  %1156 = vmatpush3.bf16.msra.mxu0 %v871_v44  ;;  %v333_v41 = vsel %vm1282_vm4, %v328_v33, %v332_v35  ;;  %v347_v5 = vsel %vm1282_vm4, %v342_v34, %v346_v37  ;;  %v386_v10 = vshll.u32 %v1044_v45, 16  ;;  %v400_v53 = vshll.u32 %v1045_v46, 16 }
  0x32   : > { %v407_v54 = vrot.slane %v405_v40, 4  ;;  %v410_v42 = vrot.slane %v408_v47, 5  ;;  %v421_v57 = vrot.slane %v419_v48, 4  ;;  %v356_v58 = vrot.slane %v355_v49, 4 }
  0x33   : > { %v360_v59 = vrot.slane %v358_v55, 5  ;;  %v424_v60 = vrot.slane %v422_v50, 5  ;;  %v370_v61 = vrot.slane %v369_v51, 4  ;;  %v1078_v43 = vcombine.low %v333_v41, %v347_v5 }
  0x34   : > { %1132 = vmatmul.mubr.msk.bf16.gmra.mxu1 %vm563_vm6, %v1059_v56  ;;  %v374_v62 = vrot.slane %v372_v4, 5  ;;  %v384_v63 = vrot.slane %v383_v39, 4  ;;  %v398_v1 = vrot.slane %v397_v0, 4  ;;  %v388_v6 = vrot.slane %v386_v10, 5 }
  0x35   : > { %v402_v7 = vrot.slane %v400_v53, 5  ;;  %v361_v9 = vsel %vm1282_vm4, %v356_v58, %v360_v59  ;;  %v411_v11 = vor.u32 %v410_v42, %v407_v54  ;;  %v414_v13 = vshll.u32 %v1046_v2, 16 }
  0x36   : > { %v375_v12 = vsel %vm1282_vm4, %v370_v61, %v374_v62  ;;  %v425_v16 = vor.u32 %v424_v60, %v421_v57  ;;  %v428_v3 = vshll.u32 %v1047_v8, 16  ;;  %v389_v17 = vsel %vm1282_vm4, %v384_v63, %v388_v6 }
  0x37   : > { %v403_v14 = vsel %vm1282_vm4, %v398_v1, %v402_v7  ;;  %v1079_v15 = vcombine.low %v361_v9, %v375_v12  ;;  %v416_v19 = vrot.slane %v414_v13, 5 }
  0x38   : > { %1142 = vmatmul.mubr.msk.bf16.gmra.mxu0 %vm654_vm7, %v1359_v52  ;;  %v412_v52 = vrot.slane %v411_v11, 4  ;;  %v1080_v18 = vcombine.low %v389_v17, %v403_v14  ;;  %v426_v30 = vrot.slane %v425_v16, 4  ;;  %v430_v36 = vrot.slane %v428_v3, 5 }
  0x39   : > { %1157 = vmatprep.mubr.msk.bf16.mxu0 %vm654_vm7, %v1078_v43  ;;  %v1086_v43 = vld [vmem:[%s1466_s2] ss:$0 sm:$0xff] }
  0x3a   : > { %v417_v20 = vsel %vm1282_vm4, %v412_v52, %v416_v19  ;;  %v431_v21 = vsel %vm1282_vm4, %v426_v30, %v430_v36 }
  0x3b   : > { %v1081_v22 = vcombine.low %v417_v20, %v431_v21 }
  0x40   : > { %1158 = vmatmul.mubr.msk.bf16.vlgmr.msra.gmra.mxu0 %vm654_vm7, %v1079_v15 }
  0x41   : > { %1161 = vmatprep.mubr.msk.bf16.mxu0 %vm654_vm7, %v1080_v18 }
  0x48   : > { %1162 = vmatmul.mubr.msk.bf16.gmra.mxu0 %vm654_vm7, %v1081_v22 }
  0x8e   : > { %v746_v23 = vpop.permute.xlu0 %745 }
  0x8f   : > { %1147 = vmatprep.mubr.msk.bf16.mxu1 %vm654_vm7, %v746_v23 }
  0x92   : > { %v748_v24 = vpop.permute.xlu0 %747 }
  0x93   : > { %1148 = vmatmul.mubr.msk.bf16.vlgmr.msra.gmra.mxu1 %vm654_vm7, %v748_v24 }
  0x98   : > { %v750_v25 = vpop.permute.xlu1 %749 }
  0x99   : > { %1151 = vmatprep.mubr.msk.bf16.mxu1 %vm654_vm7, %v750_v25 }
  0x9c   : > { %v752_v26 = vpop.permute.xlu1 %751 }
  0x9d   : > { %1152 = vmatmul.mubr.msk.bf16.gmra.mxu1 %vm654_vm7, %v752_v26 }
  0xe4   : > { %v1123_v31 = vpop.f32.mrf.mxu1 }
  0xe6   : > { %v522_v32 = vpop.f32.mrf.mxu1 }
  0xe8   : > { %v1119_v27 = vpop.f32.mrf.mxu0  ;;  %v1124_v34 = vpop.f32.mrf.mxu1 }
  0xea   : > { %v506_v28 = vpop.f32.mrf.mxu0  ;;  %v525_v37 = vpop.f32.mrf.mxu1 }
  0xec   : > { %v1120_v29 = vpop.f32.mrf.mxu0  ;;  %v1129_v39 = vpop.f32.mrf.mxu1 }
  0xed   : > { %v619_v5 = vadd.f32 %v1129_v39, %v1119_v27 }
  0xee   : > { %v509_v56 = vpop.f32.mrf.mxu0  ;;  %v610_v44 = vpop.f32.mrf.mxu1 }
  0xef   : > { %v611_v10 = vadd.f32 %v610_v44, %v506_v28 }
  0xf0   : > { %v1139_v33 = vpop.f32.mrf.mxu0  ;;  %v1130_v46 = vpop.f32.mrf.mxu1 }
  0xf1   : > { %v738_v42 = vadd.f32 %v1139_v33, %v619_v5  ;;  %v622_v57 = vadd.f32 %v1130_v46, %v1120_v29 }
  0xf2   : > { %v705_v35 = vpop.f32.mrf.mxu0  ;;  %v613_v48 = vpop.f32.mrf.mxu1 }
  0xf3   : > { %v736_v59 = vadd.f32 %v705_v35, %v611_v10  ;;  %v614_v60 = vadd.f32 %v613_v48, %v509_v56 }
  0xf4   : > { %v1140_v38 = vpop.f32.mrf.mxu0  ;;  %v1133_v55 = vpop.f32.mrf.mxu1 }
  0xf5   : > { %v739_v63 = vadd.f32 %v1140_v38, %v622_v57  ;;  %v635_v7 = vadd.f32 %v1133_v55, %v1123_v31 }
  0xf6   : > { %v708_v40 = vpop.f32.mrf.mxu0  ;;  %v626_v50 = vpop.f32.mrf.mxu1 }
  0xf7   : > { %v737_v9 = vadd.f32 %v708_v40, %v614_v60  ;;  %v627_v17 = vadd.f32 %v626_v50, %v522_v32 }
  0xf8   : > { %v1143_v45 = vpop.f32.mrf.mxu0  ;;  %v1134_v4 = vpop.f32.mrf.mxu1 }
  0xf9   : > { %v742_v18 = vadd.f32 %v1143_v45, %v635_v7  ;;  %v638_v19 = vadd.f32 %v1134_v4, %v1124_v34 }
  0xfa   : > { %v721_v47 = vpop.f32.mrf.mxu0  ;;  %v629_v53 = vpop.f32.mrf.mxu1 }
  0xfb   : > { %v740_v22 = vadd.f32 %v721_v47, %v627_v17  ;;  %v630_v23 = vadd.f32 %v629_v53, %v525_v37 }
  0xfc   : > { %v1144_v49 = vpop.f32.mrf.mxu0 }
  0xfd   : > { %v743_v27 = vadd.f32 %v1144_v49, %v638_v19 }
  0xfe   : > { %v724_v0 = vpop.f32.mrf.mxu0 }
  0xff   : > { %v741_v32 = vadd.f32 %v724_v0, %v630_v23 }
 0x100   : > { %v1159_v51 = vpop.f32.mrf.mxu0 }
 0x102   : > { %v907_v41 = vpop.f32.mrf.mxu0 }
 0x104   : > { %v1160_v54 = vpop.f32.mrf.mxu0 }
 0x106   : > { %v910_v2 = vpop.f32.mrf.mxu0 }
 0x108   : > { %v1163_v16 = vpop.f32.mrf.mxu0 }
 0x10a   : > { %v923_v20 = vpop.f32.mrf.mxu0 }
 0x10c   : > { %v1164_v31 = vpop.f32.mrf.mxu0 }
 0x10e   : > { %v926_v44 = vpop.f32.mrf.mxu0 }
 0x153   : > { %v1149_v58 = vpop.f32.mrf.mxu1 }
 0x154   : > { %v839_v61 = vadd.f32 %v1149_v58, %v738_v42 }
 0x155   : > { %v806_v62 = vpop.f32.mrf.mxu1 }
 0x156   : > { %v940_v1 = vadd.f32 %v1159_v51, %v839_v61  ;;  %v837_v6 = vadd.f32 %v806_v62, %v736_v59 }
 0x157   : > { %v1150_v8 = vpop.f32.mrf.mxu1 }
 0x158   : > { %v955_v11 = vadd.f32 %v1086_v43, %v940_v1  ;;  %v938_v12 = vadd.f32 %v907_v41, %v837_v6  ;;  %v840_v13 = vadd.f32 %v1150_v8, %v739_v63 }
 0x159   : > { %v809_v3 = vpop.f32.mrf.mxu1 }
 0x15a   : > { %963 = vst.msk [vmem:[%s1443_s7 + $0x10] sm:$0xff] %vm654_vm7, %v955_v11  ;;  %v953_v14 = vadd.f32 %v1086_v43, %v938_v12  ;;  %v941_v15 = vadd.f32 %v1160_v54, %v840_v13  ;;  %v838_v52 = vadd.f32 %v809_v3, %v737_v9 }
 0x15c   : > { %961 = vst.msk [vmem:[%s1443_s7] sm:$0xff] %vm654_vm7, %v953_v14  ;;  %v956_v30 = vadd.f32 %v1086_v43, %v941_v15  ;;  %v939_v36 = vadd.f32 %v910_v2, %v838_v52 }
 0x15d   : > { %v1153_v21 = vpop.f32.mrf.mxu1 }
 0x15e   : > { %964 = vst.msk [vmem:[%s1443_s7 + $0x18] sm:$0xff] %vm654_vm7, %v956_v30  ;;  %v954_v24 = vadd.f32 %v1086_v43, %v939_v36  ;;  %v843_v25 = vadd.f32 %v1153_v21, %v742_v18 }
 0x15f   : > { %v822_v26 = vpop.f32.mrf.mxu1 }
 0x160   : > { %962 = vst.msk [vmem:[%s1443_s7 + $0x8] sm:$0xff] %vm654_vm7, %v954_v24  ;;  %v944_v28 = vadd.f32 %v1163_v16, %v843_v25  ;;  %v841_v29 = vadd.f32 %v822_v26, %v740_v22 }
 0x161   : > { %v1154_v56 = vpop.f32.mrf.mxu1 }
 0x162   : > { %v959_v33 = vadd.f32 %v1086_v43, %v944_v28  ;;  %v942_v34 = vadd.f32 %v923_v20, %v841_v29  ;;  %v844_v35 = vadd.f32 %v1154_v56, %v743_v27 }
 0x163   : > { %v825_v37 = vpop.f32.mrf.mxu1 }
 0x164   : > { %967 = vst.msk [vmem:[%s1443_s7 + $0x30] sm:$0xff] %vm654_vm7, %v959_v33  ;;  %v957_v38 = vadd.f32 %v1086_v43, %v942_v34  ;;  %v945_v39 = vadd.f32 %v1164_v31, %v844_v35  ;;  %v842_v40 = vadd.f32 %v825_v37, %v741_v32 }
 0x166   : > { %965 = vst.msk [vmem:[%s1443_s7 + $0x20] sm:$0xff] %vm654_vm7, %v957_v38  ;;  %v960_v45 = vadd.f32 %v1086_v43, %v945_v39  ;;  %v943_v46 = vadd.f32 %v926_v44, %v842_v40 }
 0x168   : > { %968 = vst.msk [vmem:[%s1443_s7 + $0x38] sm:$0xff] %vm654_vm7, %v960_v45  ;;  %v958_v47 = vadd.f32 %v1086_v43, %v943_v46 }
 0x16a   : > { %966 = vst.msk [vmem:[%s1443_s7 + $0x28] sm:$0xff] %vm654_vm7, %v958_v47 }
 0x16b PF: > { %s13_s12 = sadd.s32 1, %s1198_s12  }
 0x16c   : > { %p10_p4 = scmp.ge.s32.totalorder %s13_s12, 4  }
 0x16e   :  { %12 = sbr.rel (!%p10_p4) target bundleno = 1 (0x1), region = 63 }

</bundles_post_ra>
